<compile_context>
chip_gen: v6e
topology: v6e:2x2x1
jax: 0.10.0
libtpu: 0.0.40
codegen_flags: <defaults>
</compile_context>

<pallas_src>
import jax
import jax.numpy as jnp
from jax.experimental import pallas as pl
from jax.experimental.pallas import tpu as pltpu

INPUT_DIM = 5
HIDDEN_DIM = 64
OUTPUT_DIM = 1


def _round_up(n, m):
    return ((n + m - 1) // m) * m


def mlp_kernel(xt_ref, w1t_ref, b1t_ref, w2t_ref, b2t_ref, w3_ref, b3_ref, o_ref):
    # Transposed layout: activations are [features, batch] with batch on lanes.
    xt = xt_ref[...]        # (5, Bb)
    w1t = w1t_ref[...]      # (64, 5)

    # ---- Layer 1 on the VPU: K=5 is far too small to be worth an MXU pass.
    # Unrolled 5-term broadcast multiply-accumulate:
    #   w1 column (64,1) broadcasts over lanes, x row (1,Bb) over sublanes.
    h1 = b1t_ref[...]                                   # (64, 1) bias seed
    for k in range(INPUT_DIM):                          # static unroll (5 terms)
        h1 = h1 + w1t[:, k:k + 1] * xt[k:k + 1, :]
    h1 = jnp.maximum(h1, 0.0)                           # (64, Bb)

    # ---- Layer 2 on the MXU: (64,64) @ (64,Bb) -> (64,Bb), + bias, ReLU
    h2 = jnp.dot(w2t_ref[...], h1, preferred_element_type=jnp.float32)
    h2 = jnp.maximum(h2 + b2t_ref[...], 0.0)

    # ---- Layer 3 on the VPU + XLU: M=1 matmul would waste a full MXU pass.
    # Elementwise multiply by the (64,1) weight column, sublane-reduce, + bias.
    logits = jnp.sum(w3_ref[...] * h2, axis=0, keepdims=True) + b3_ref[...]
    # Padded batch columns (beyond the real B) compute sigmoid of junk-but-finite
    # values and are sliced off in the wrapper — harmless.
    o_ref[...] = jax.nn.sigmoid(logits).astype(o_ref.dtype)


def nn_forward(x, params, *, block_batch=2048):
    """Pallas forward pass matching NN.forward.

    x:      [B, 5] float32 (same convention as torch.nn.Linear input)
    params: (w1, b1, w2, b2, w3, b3) stored as [in, out] / [1, out] so the math
            is x @ W + b (identical to the PyTorch module).
    returns [B, 1] float32.
    """
    w1, b1, w2, b2, w3, b3 = params
    B = x.shape[0]

    # Clamp the tile for small batches: keep a multiple of 128 lanes and, when
    # possible, >=2 grid blocks (v7x has 2 TensorCores). Large batches use the
    # requested block_batch (default 2048) so per-step overhead is amortized.
    bb = min(block_batch, max(128, _round_up(pl.cdiv(B, 2), 128)))
    num_blocks = pl.cdiv(B, bb)
    B_pad = num_blocks * bb

    # Transpose to batch-on-lanes layout and pad batch up to a tile multiple.
    # (Tiny per-sample cost: 5 f32/sample; fuses into a single copy in XLA.)
    xt = jnp.pad(x.T, ((0, 0), (0, B_pad - B)))          # (5, B_pad)
    w1t, w2t = w1.T, w2.T                                 # (64,5) (64,64)
    b1t, b2t = b1.T, b2.T                                 # (64,1) (64,1)
    # w3 is already a (64,1) column (used directly on the VPU); b3 is (1,1).

    grid = (num_blocks,)
    out_t = pl.pallas_call(
        mlp_kernel,
        out_shape=jax.ShapeDtypeStruct((OUTPUT_DIM, B_pad), jnp.float32),
        grid=grid,
        in_specs=[
            # batch-tiled (lane-dense) input
            pl.BlockSpec((INPUT_DIM, bb), lambda i: (0, i)),
            # weights / biases: whole (tiny) arrays, resident across grid steps
            pl.BlockSpec((HIDDEN_DIM, INPUT_DIM), lambda i: (0, 0)),
            pl.BlockSpec((HIDDEN_DIM, 1), lambda i: (0, 0)),
            pl.BlockSpec((HIDDEN_DIM, HIDDEN_DIM), lambda i: (0, 0)),
            pl.BlockSpec((HIDDEN_DIM, 1), lambda i: (0, 0)),
            pl.BlockSpec((HIDDEN_DIM, OUTPUT_DIM), lambda i: (0, 0)),
            pl.BlockSpec((1, OUTPUT_DIM), lambda i: (0, 0)),
        ],
        out_specs=pl.BlockSpec((OUTPUT_DIM, bb), lambda i: (0, i)),
        compiler_params=pltpu.CompilerParams(
            dimension_semantics=("parallel",),
        ),
    )(xt, w1t, b1t, w2t, b2t, w3, b3)

    # Back to the public (B, 1) PyTorch layout. out_t is (1, B_pad), so this is
    # a pure reshape (no strided transpose / extra HBM pass); drop padding.
    return out_t.reshape(-1)[:B].reshape(B, OUTPUT_DIM)


def init_params(key):
    """Deterministic init matching torch.nn.Linear (U(-1/sqrt(fan_in), 1/sqrt(fan_in))).
       Stored as [in, out] / [1, out] so the reference math is x @ W + b."""
    k1, k2, k3, k4, k5, k6 = jax.random.split(key, 6)

    def uinit(k, fan_in, shape):
        bound = 1.0 / jnp.sqrt(fan_in)
        return jax.random.uniform(k, shape, jnp.float32, -bound, bound)

    w1 = uinit(k1, INPUT_DIM, (INPUT_DIM, HIDDEN_DIM))
    b1 = uinit(k2, INPUT_DIM, (1, HIDDEN_DIM))
    w2 = uinit(k3, HIDDEN_DIM, (HIDDEN_DIM, HIDDEN_DIM))
    b2 = uinit(k4, HIDDEN_DIM, (1, HIDDEN_DIM))
    w3 = uinit(k5, HIDDEN_DIM, (HIDDEN_DIM, OUTPUT_DIM))
    b3 = uinit(k6, HIDDEN_DIM, (1, OUTPUT_DIM))
    return (w1, b1, w2, b2, w3, b3)


def nn_reference(x, params):
    w1, b1, w2, b2, w3, b3 = params
    h = jnp.maximum(x @ w1 + b1, 0.0)
    h = jnp.maximum(h @ w2 + b2, 0.0)
    return jax.nn.sigmoid(h @ w3 + b3)


if __name__ == "__main__":
    key = jax.random.PRNGKey(0)
    kx, kp = jax.random.split(key)

    # Batch not a multiple of the tile -> exercises the padding path; the
    # block-size clamp picks bb=256 here, giving a 2-step grid (both v7x TCs).
    batch = 300
    x = jax.random.normal(kx, (batch, INPUT_DIM), dtype=jnp.float32)
    params = init_params(kp)

    out = nn_forward(x, params)
    out = jax.block_until_ready(out)

    ref = nn_reference(x, params)
    assert out.shape == (batch, OUTPUT_DIM)
    # Tolerance accounts for default (bf16-pass) MXU precision on the 64x64
    # layer; set precision=HIGHEST in both kernel and reference if bit-level
    # f32 matmul accuracy is required.
    assert jnp.allclose(out, ref, atol=2e-3, rtol=2e-3), "mismatch vs reference"

    print("KERNEL_OK")
</pallas_src>

<mosaic_0001>
module attributes {stable_mosaic.version = 11 : i64} {
  func.func @mlp_kernel(%arg0: i32, %arg1: memref<5x256xf32, #tpu.memory_space<vmem>>, %arg2: memref<64x5xf32, #tpu.memory_space<vmem>>, %arg3: memref<64x1xf32, #tpu.memory_space<vmem>>, %arg4: memref<64x64xf32, #tpu.memory_space<vmem>>, %arg5: memref<64x1xf32, #tpu.memory_space<vmem>>, %arg6: memref<64x1xf32, #tpu.memory_space<vmem>>, %arg7: memref<1x1xf32, #tpu.memory_space<vmem>>, %arg8: memref<1x256xf32, #tpu.memory_space<vmem>>) attributes {dimension_semantics = [#tpu.dimension_semantics<parallel>], iteration_bounds = array<i64: 2>, scalar_prefetch = 0 : i64, scratch_operands = 0 : i64, tpu.core_type = #tpu.core_type<tc>, window_params = [{transform_indices = @transform_0, window_bounds = array<i64: 5, 256>}, {pipeline_mode = #tpu.pipeline_mode<synchronous>, transform_indices = @transform_1, window_bounds = array<i64: 64, 5>}, {pipeline_mode = #tpu.pipeline_mode<synchronous>, transform_indices = @transform_2, window_bounds = array<i64: 64, 1>}, {pipeline_mode = #tpu.pipeline_mode<synchronous>, transform_indices = @transform_3, window_bounds = array<i64: 64, 64>}, {pipeline_mode = #tpu.pipeline_mode<synchronous>, transform_indices = @transform_4, window_bounds = array<i64: 64, 1>}, {pipeline_mode = #tpu.pipeline_mode<synchronous>, transform_indices = @transform_5, window_bounds = array<i64: 64, 1>}, {pipeline_mode = #tpu.pipeline_mode<synchronous>, transform_indices = @transform_6, window_bounds = array<i64: 1, 1>}, {transform_indices = @transform_7, window_bounds = array<i64: 1, 256>}]} {
    %c0 = arith.constant 0 : index
    %c0_0 = arith.constant 0 : index
    %0 = vector.load %arg1[%c0, %c0_0] : memref<5x256xf32, #tpu.memory_space<vmem>>, vector<5x256xf32>
    %c0_1 = arith.constant 0 : index
    %c0_2 = arith.constant 0 : index
    %1 = vector.load %arg2[%c0_1, %c0_2] : memref<64x5xf32, #tpu.memory_space<vmem>>, vector<64x5xf32>
    %c0_3 = arith.constant 0 : index
    %c0_4 = arith.constant 0 : index
    %2 = vector.load %arg3[%c0_3, %c0_4] : memref<64x1xf32, #tpu.memory_space<vmem>>, vector<64x1xf32>
    %3 = vector.extract_strided_slice %1 {offsets = [0, 0], sizes = [64, 1], strides = [1, 1]} : vector<64x5xf32> to vector<64x1xf32>
    %4 = vector.extract_strided_slice %0 {offsets = [0, 0], sizes = [1, 256], strides = [1, 1]} : vector<5x256xf32> to vector<1x256xf32>
    %5 = vector.broadcast %3 : vector<64x1xf32> to vector<64x256xf32>
    %6 = vector.broadcast %4 : vector<1x256xf32> to vector<64x256xf32>
    %7 = arith.mulf %5, %6 : vector<64x256xf32>
    %8 = vector.broadcast %2 : vector<64x1xf32> to vector<64x256xf32>
    %9 = arith.addf %8, %7 : vector<64x256xf32>
    %10 = vector.extract_strided_slice %1 {offsets = [0, 1], sizes = [64, 1], strides = [1, 1]} : vector<64x5xf32> to vector<64x1xf32>
    %11 = vector.extract_strided_slice %0 {offsets = [1, 0], sizes = [1, 256], strides = [1, 1]} : vector<5x256xf32> to vector<1x256xf32>
    %12 = vector.broadcast %10 : vector<64x1xf32> to vector<64x256xf32>
    %13 = vector.broadcast %11 : vector<1x256xf32> to vector<64x256xf32>
    %14 = arith.mulf %12, %13 : vector<64x256xf32>
    %15 = arith.addf %9, %14 : vector<64x256xf32>
    %16 = vector.extract_strided_slice %1 {offsets = [0, 2], sizes = [64, 1], strides = [1, 1]} : vector<64x5xf32> to vector<64x1xf32>
    %17 = vector.extract_strided_slice %0 {offsets = [2, 0], sizes = [1, 256], strides = [1, 1]} : vector<5x256xf32> to vector<1x256xf32>
    %18 = vector.broadcast %16 : vector<64x1xf32> to vector<64x256xf32>
    %19 = vector.broadcast %17 : vector<1x256xf32> to vector<64x256xf32>
    %20 = arith.mulf %18, %19 : vector<64x256xf32>
    %21 = arith.addf %15, %20 : vector<64x256xf32>
    %22 = vector.extract_strided_slice %1 {offsets = [0, 3], sizes = [64, 1], strides = [1, 1]} : vector<64x5xf32> to vector<64x1xf32>
    %23 = vector.extract_strided_slice %0 {offsets = [3, 0], sizes = [1, 256], strides = [1, 1]} : vector<5x256xf32> to vector<1x256xf32>
    %24 = vector.broadcast %22 : vector<64x1xf32> to vector<64x256xf32>
    %25 = vector.broadcast %23 : vector<1x256xf32> to vector<64x256xf32>
    %26 = arith.mulf %24, %25 : vector<64x256xf32>
    %27 = arith.addf %21, %26 : vector<64x256xf32>
    %28 = vector.extract_strided_slice %1 {offsets = [0, 4], sizes = [64, 1], strides = [1, 1]} : vector<64x5xf32> to vector<64x1xf32>
    %29 = vector.extract_strided_slice %0 {offsets = [4, 0], sizes = [1, 256], strides = [1, 1]} : vector<5x256xf32> to vector<1x256xf32>
    %30 = vector.broadcast %28 : vector<64x1xf32> to vector<64x256xf32>
    %31 = vector.broadcast %29 : vector<1x256xf32> to vector<64x256xf32>
    %32 = arith.mulf %30, %31 : vector<64x256xf32>
    %33 = arith.addf %27, %32 : vector<64x256xf32>
    %cst = arith.constant 0.000000e+00 : f32
    %34 = vector.broadcast %cst : f32 to vector<64x256xf32>
    %35 = arith.maximumf %33, %34 : vector<64x256xf32>
    %c0_5 = arith.constant 0 : index
    %c0_6 = arith.constant 0 : index
    %36 = vector.load %arg4[%c0_5, %c0_6] : memref<64x64xf32, #tpu.memory_space<vmem>>, vector<64x64xf32>
    %cst_7 = arith.constant dense<0.000000e+00> : vector<64x256xf32>
    %37 = tpu.matmul %36, %35, %cst_7 {dimension_numbers = #tpu.dot_dimension_numbers<[1], [0], [0], [1], [0, 0, 1, 1], [], []>} : vector<64x64xf32>, vector<64x256xf32>, vector<64x256xf32> -> vector<64x256xf32>
    %c0_8 = arith.constant 0 : index
    %c0_9 = arith.constant 0 : index
    %38 = vector.load %arg5[%c0_8, %c0_9] : memref<64x1xf32, #tpu.memory_space<vmem>>, vector<64x1xf32>
    %39 = vector.broadcast %38 : vector<64x1xf32> to vector<64x256xf32>
    %40 = arith.addf %37, %39 : vector<64x256xf32>
    %cst_10 = arith.constant 0.000000e+00 : f32
    %41 = vector.broadcast %cst_10 : f32 to vector<64x256xf32>
    %42 = arith.maximumf %40, %41 : vector<64x256xf32>
    %c0_11 = arith.constant 0 : index
    %c0_12 = arith.constant 0 : index
    %43 = vector.load %arg6[%c0_11, %c0_12] : memref<64x1xf32, #tpu.memory_space<vmem>>, vector<64x1xf32>
    %44 = vector.broadcast %43 : vector<64x1xf32> to vector<64x256xf32>
    %45 = arith.mulf %44, %42 : vector<64x256xf32>
    %cst_13 = arith.constant dense<0.000000e+00> : vector<256xf32>
    %46 = vector.multi_reduction <add>, %45, %cst_13 [0] : vector<64x256xf32> to vector<256xf32>
    %47 = vector.shape_cast %46 : vector<256xf32> to vector<1x256xf32>
    %c0_14 = arith.constant 0 : index
    %c0_15 = arith.constant 0 : index
    %48 = vector.load %arg7[%c0_14, %c0_15] : memref<1x1xf32, #tpu.memory_space<vmem>>, vector<1x1xf32>
    %49 = vector.broadcast %48 : vector<1x1xf32> to vector<1x256xf32>
    %50 = arith.addf %47, %49 : vector<1x256xf32>
    %51 = arith.negf %50 : vector<1x256xf32>
    %52 = math.exp %51 : vector<1x256xf32>
    %cst_16 = arith.constant 1.000000e+00 : f32
    %53 = vector.broadcast %cst_16 : f32 to vector<1x256xf32>
    %54 = arith.addf %53, %52 : vector<1x256xf32>
    %55 = arith.divf %53, %54 : vector<1x256xf32>
    %c0_17 = arith.constant 0 : index
    %c0_18 = arith.constant 0 : index
    %56 = vector.load %arg8[%c0_17, %c0_18] : memref<1x256xf32, #tpu.memory_space<vmem>>, vector<1x256xf32>
    tpu.vector_store %arg8[%c0_17, %c0_18], %55 {strides = array<i32>} : memref<1x256xf32, #tpu.memory_space<vmem>>, vector<1x256xf32>,
    return
  }
  func.func @transform_0(%arg0: i32) -> (i32, i32) {
    %c0_i32 = arith.constant 0 : i32
    %c0_i32_0 = arith.constant 0 : i32
    return %c0_i32, %arg0 : i32, i32
  }
  func.func @transform_1(%arg0: i32) -> (i32, i32) {
    %c0_i32 = arith.constant 0 : i32
    %c0_i32_0 = arith.constant 0 : i32
    %c0_i32_1 = arith.constant 0 : i32
    return %c0_i32, %c0_i32_0 : i32, i32
  }
  func.func @transform_2(%arg0: i32) -> (i32, i32) {
    %c0_i32 = arith.constant 0 : i32
    %c0_i32_0 = arith.constant 0 : i32
    %c0_i32_1 = arith.constant 0 : i32
    return %c0_i32, %c0_i32_0 : i32, i32
  }
  func.func @transform_3(%arg0: i32) -> (i32, i32) {
    %c0_i32 = arith.constant 0 : i32
    %c0_i32_0 = arith.constant 0 : i32
    %c0_i32_1 = arith.constant 0 : i32
    return %c0_i32, %c0_i32_0 : i32, i32
  }
  func.func @transform_4(%arg0: i32) -> (i32, i32) {
    %c0_i32 = arith.constant 0 : i32
    %c0_i32_0 = arith.constant 0 : i32
    %c0_i32_1 = arith.constant 0 : i32
    return %c0_i32, %c0_i32_0 : i32, i32
  }
  func.func @transform_5(%arg0: i32) -> (i32, i32) {
    %c0_i32 = arith.constant 0 : i32
    %c0_i32_0 = arith.constant 0 : i32
    %c0_i32_1 = arith.constant 0 : i32
    return %c0_i32, %c0_i32_0 : i32, i32
  }
  func.func @transform_6(%arg0: i32) -> (i32, i32) {
    %c0_i32 = arith.constant 0 : i32
    %c0_i32_0 = arith.constant 0 : i32
    %c0_i32_1 = arith.constant 0 : i32
    return %c0_i32, %c0_i32_0 : i32, i32
  }
  func.func @transform_7(%arg0: i32) -> (i32, i32) {
    %c0_i32 = arith.constant 0 : i32
    %c0_i32_0 = arith.constant 0 : i32
    return %c0_i32, %arg0 : i32, i32
  }
}

</mosaic_0001>

<bundles_post_ra>
// kernel: tpu_custom_call.1
= control target key start
LH: loop header
LB: loop body
LE: loop exit
PB: predicated region body
PF: predicated region fallthrough
CT: control target
= control target key end

     0   :  { %s1837_s0 = inlined_call_operand.vmem [shape: f32[5,512], index: 0, kind: input, shape index: {}]   ;;  %s1838_s1 = inlined_call_operand.vmem [shape: f32[64,5], index: 1, kind: input, shape index: {}]   ;;  %s1839_s2 = inlined_call_operand.vmem [shape: f32[64,1], index: 2, kind: input, shape index: {}]   ;;  %s1840_s3 = inlined_call_operand.vmem [shape: f32[64,64], index: 3, kind: input, shape index: {}]   ;;  %s1841_s4 = inlined_call_operand.vmem [shape: f32[64,1], index: 4, kind: input, shape index: {}]   ;;  %s1842_s5 = inlined_call_operand.vmem [shape: f32[64,1], index: 5, kind: input, shape index: {}]   ;;  %s1843_s6 = inlined_call_operand.<no memory space> [shape: f32[1,1], index: 6, kind: input, shape index: {}]   ;;  %s1844_s7 = inlined_call_operand.hbm [shape: f32[1,512], index: 7, kind: output, shape index: {}]  }
   0x1   :  { %v12_v0 = vstv %s1843_s6 }
   0x2   :  { %13 = vst [vmem:[#allocation2] sm:$0x1] %v12_v0 }
   0x3   :  { %14 = vsyncpa [#allocation4], 0 }
   0x4   :  { %16 = vsyncpa [#allocation4 + $0x1], 0  ;;  %s1383_s26 = smov 0   ;;  %s1385_s27 = smov 0  }
   0x5   :  { %s1387_s28 = smov 0   ;;  %s1389_s29 = smov 0  }
   0x6 LB: > { %s1404_s6 = sadd.s32 4294967295, %s1330_s29   ;;  %s1145_s30 = sadd.s32 4294967294, %s1330_s29   ;;  %s1330_s29 = sphi %s1389_s29, %s1850_s29   ;;  %s1326_s28 = sphi %s1387_s28, %s1849_s28   ;;  %s1322_s27 = sphi %s1385_s27, %s1848_s27   ;;  %s1318_s26 = sphi %s1383_s26, %s1847_s26  }
   0x7   : > { %s1408_s8 = sadd.s32 1, %s1330_s29   ;;  %s181_s9 = sadd.s32 1, %s1326_s28 }
   0x8   : > { %s178_s10 = ssub.s32 %s1330_s29, %s1408_s8  ;;  %p191_p0 = scmp.ne.s32.totalorder %s1326_s28, %s1322_s27 }
   0x9   : > { %p179_p1 = scmp.eq.s32.totalorder %s178_s10, 0  ;;  %p192_p2 = scmp.eq.s32.totalorder %s1404_s6, 1 }
   0xa   : > { %p197_p3 = scmp.ne.s32.totalorder %s1322_s27, %s1318_s26  ;;  %p198_p4 = scmp.eq.s32.totalorder %s1145_s30, 1 }
   0xb   : > { %s1419_s11 = scalar_select %p179_p1, %s1326_s28, %s181_s9  }
   0xc   : > { %p1421_p5 = por %p192_p2, %p191_p0  ;;  %p1425_p6 = por %p198_p4, %p197_p3 }
   0xd   : > { %p1148_p7 = scmp.ge.s32.totalorder %s1330_s29, 1  ;;  %p243_p8 = scmp.lt.s32.totalorder %s1330_s29, 3 }
   0xf   : > { %p244_p9 = pnand %p1148_p7, %p243_p8 }
  0x10   : > { %s1150_s16 = sshll.u32 (!%p244_p9), %s1404_s6, 1  ;;  %s272_s24 = sand.u32 (!%p244_p9), 1, %s1322_s27  }
  0x11   : > { %247 = sbr.rel (%p244_p9) target bundleno = 586 (0x24a), region = 48  ;;  %p276_p10 = scmp.lt.s32.totalorder (!%p244_p9), %s1150_s16, 3 }
  0x12   : > { %s1149_s25 = sshll.u32 (!%p244_p9), %s272_s24, 1  ;;  %s1167_s30 = sshll.u32 (!%p244_p9), %s1404_s6, 5 }
  0x13   : > { %s274_s9 = scalar_lea.vmem (!%p244_p9), [#allocation3], %s1149_s25  ;;  %s1339_s19 = smov (!%p244_p9), [#allocation3]  }
  0x14   : > { %s1086_s10 = sshll.u32 (!%p244_p9), %s274_s9, 4  ;;  %s1274_s6 = sshll.u32 (!%p244_p9), %s1339_s19, 4  ;;  %s1087_s10 = int_to_ptr.vmem [resolvable:$true] %s1086_s10  ;;  %s1275_s6 = int_to_ptr.vmem [resolvable:$false] %s1274_s6 }
  0x15   : > { %s1270_s18 = scalar_lea.vmem (!%p244_p9), %s1087_s10, 32  ;;  %p1277_p0 = scmp.lt.s32.totalorder (!%p244_p9), %s1087_s10, %s1275_s6 }
  0x16   : > { %v299_v1 = vld [vmem:[%s1839_s2 + $0x38] sm:$0xff]  ;;  %v1332_v3 = vmov 0   ;;  %v290_v4 = vld [vmem:[%s1838_s1 + $0x30] sm:$0xff]  ;;  %v1333_v5 = vmov 1   ;;  %v289_v6 = vld [vmem:[%s1838_s1 + $0x28] sm:$0xff]  ;;  %v1334_v9 = vmov 2   ;;  %v340_v34 = vlaneseq  ;;  %p1271_p11 = scmp.ne.s32.totalorder %s1087_s10, %s1270_s18 }
  0x17   : > { %v291_v2 = vld [vmem:[%s1838_s1 + $0x38] sm:$0xff]  ;;  %1231 = vset.pattern.permute.xlu1 %v1332_v3  ;;  %1230 = vset.pattern.permute.xlu0 %v1332_v3  ;;  %v298_v7 = vld [vmem:[%s1839_s2 + $0x30] sm:$0xff]  ;;  %v297_v8 = vld [vmem:[%s1839_s2 + $0x28] sm:$0xff]  ;;  %v1335_v10 = vmov 3   ;;  %v1336_v17 = vmov 4   ;;  %v1337_v33 = vmov 0.0  }
  0x18   : > { %401 = vperm.xlu1 %1231, %v299_v1   ;;  %337 = vperm.xlu0 %1230, %v291_v2   ;;  %v288_v11 = vld [vmem:[%s1838_s1 + $0x20] sm:$0xff]  ;;  %v287_v12 = vld [vmem:[%s1838_s1 + $0x18] sm:$0xff]  ;;  %v286_v13 = vld [vmem:[%s1838_s1 + $0x10] sm:$0xff]  ;;  %s1852_s16 = smov (!%p276_p10, %s1150_s16), 3  ;;  %v1530_v37 = vshrl.u32 %v340_v34, 7  ;;  %vm780_vm0 = vcmask 523264   ;;  %p1272_p12 = pnand %p1271_p11, %p1421_p5 }
  0x19   : > { %v1470_v14 = vld [vmem:[%s1838_s1 + $0x8] sm:$0xff]  ;;  %v296_v15 = vld [vmem:[%s1839_s2 + $0x20] sm:$0xff]  ;;  %v295_v18 = vld [vmem:[%s1839_s2 + $0x18] sm:$0xff]  ;;  %869 = vmatprep.mubr.f32.mxu0 %v1337_v33  ;;  %893 = vmatprep.mubr.f32.mxu1 %v1337_v33  ;;  %s1151_s17 = sshll.u32 %s1852_s16, 3  ;;  %vm1068_vm1 = vcmp.lt.s32.totalorder %v340_v34, 256  ;;  %s1084_s16 = scalar_lea.hbm %s1844_s7, %s1167_s30 }
  0x1a   : > { %v284_v16 = vld [vmem:[%s1838_s1] sm:$0xff]  ;;  %v294_v19 = vld [vmem:[%s1839_s2 + $0x10] sm:$0xff]  ;;  %v293_v20 = vld [vmem:[%s1839_s2 + $0x8] sm:$0xff]  ;;  %s279_s20 = scalar_lea.vmem %s1837_s0, %s1151_s17  ;;  %v1540_v40 = vsub.s32 0, %v1530_v37  ;;  %v454_v44 = vsub.s32 1, %v1530_v37  ;;  %v526_v50 = vsub.s32 2, %v1530_v37  ;;  %p1273_p13 = pneg %p1272_p12 }
  0x1b   : > { %v292_v21 = vld [vmem:[%s1839_s2] sm:$0xff]  ;;  %v283_v42 = vld [vmem:[%s279_s20 + $0x8] sm:$0x1f]  ;;  %v734_v51 = vld [vmem:[%s1841_s4 + $0x10] sm:$0xff]  ;;  %v598_v57 = vsub.s32 3, %v1530_v37  ;;  %s1072_s17 = scalar_lea.sflag [#allocation4], %s272_s24 }
  0x1c   : > { %1232 = vset.pattern.permute.xlu1 %v1333_v5  ;;  %332 = vperm.xlu0 %1230, %v290_v4   ;;  %v282_v41 = vld [vmem:[%s279_s20] sm:$0x1f]  ;;  %v733_v47 = vld [vmem:[%s1841_s4 + $0x8] sm:$0xff]  ;;  %v1557_v49 = vrot.slane %v283_v42, %v1540_v40  ;;  %v1570_v55 = vrot.slane %v283_v42, %v454_v44  ;;  %v1579_v61 = vrot.slane %v283_v42, %v526_v50  ;;  %v735_v62 = vld [vmem:[%s1841_s4 + $0x18] sm:$0xff]  ;;  %s1276_s20 = scalar_lea.vmem %s1275_s6, 64 }
  0x1d   : > { %449 = vperm.xlu1 %1232, %v291_v2   ;;  %v732_v46 = vld [vmem:[%s1841_s4] sm:$0xff]  ;;  %v1554_v48 = vrot.slane %v282_v41, %v1540_v40  ;;  %v1568_v54 = vrot.slane %v282_v41, %v454_v44  ;;  %v1577_v60 = vrot.slane %v282_v41, %v526_v50  ;;  %v936_v44 = vld [vmem:[%s1842_s5 + $0x10] sm:$0xff]  ;;  %p1278_p1 = scmp.lt.s32.totalorder %s1276_s20, %s1270_s18 }
  0x1e   : > { %v934_v53 = vld [vmem:[%s1842_s5] sm:$0xff] }
  0x1f   : > { %v736_v63 = vld [vmem:[%s1841_s4 + $0x20] sm:$0xff]  ;;  %p1279_p2 = por %p1278_p1, %p1277_p0 }
  0x20   : > { %327 = vperm.xlu0 %1230, %v289_v6  }
  0x21   : > { %1233 = vset.pattern.permute.xlu1 %v1332_v3  ;;  %p1280_p3 = pnand %p1279_p2, %p1273_p13 }
  0x22   : > { %396 = vperm.xlu1 %1233, %v298_v7  }
  0x24   : > { %391 = vperm.xlu0 %1230, %v297_v8  }
  0x26   : > { %1234 = vset.pattern.permute.xlu1 %v1334_v9 }
  0x27   : > { %521 = vperm.xlu1 %1234, %v291_v2  }
  0x28   : > { %1238 = vset.pattern.permute.xlu0 %v1335_v10 }
  0x29   : > { %593 = vperm.xlu0 %1238, %v291_v2  }
  0x2b   : > { %1235 = vset.pattern.permute.xlu1 %v1332_v3 }
  0x2c   : > { %322 = vperm.xlu1 %1235, %v288_v11  }
  0x2d   : > { %1239 = vset.pattern.permute.xlu0 %v1333_v5 }
  0x2e   : > { %445 = vperm.xlu0 %1239, %v290_v4  }
  0x30   : > { %1236 = vset.pattern.permute.xlu1 %v1333_v5 }
  0x31   : > { %441 = vperm.xlu1 %1236, %v289_v6  }
  0x32   : > { %437 = vperm.xlu0 %1239, %v288_v11  }
  0x35   : > { %1237 = vset.pattern.permute.xlu1 %v1334_v9 }
  0x36   : > { %517 = vperm.xlu1 %1237, %v290_v4   ;;  %433 = vperm.xlu0 %1239, %v287_v12  }
  0x3a   : > { %1240 = vset.pattern.permute.xlu1 %v1332_v3  ;;  %429 = vperm.xlu0 %1239, %v286_v13  }
  0x3b   : > { %317 = vperm.xlu1 %1240, %v287_v12  }
  0x3e   : > { %425 = vperm.xlu0 %1239, %v1470_v14  }
  0x3f   : > { %386 = vperm.xlu1 %1240, %v296_v15  }
  0x42   : > { %1254 = vset.pattern.permute.xlu0 %v1334_v9 }
  0x43   : > { %1241 = vset.pattern.permute.xlu1 %v1334_v9  ;;  %497 = vperm.xlu0 %1254, %v1470_v14  }
  0x44   : > { %513 = vperm.xlu1 %1241, %v289_v6  }
  0x47   : > { %493 = vperm.xlu0 %1254, %v284_v16  }
  0x48   : > { %1242 = vset.pattern.permute.xlu1 %v1335_v10 }
  0x49   : > { %589 = vperm.xlu1 %1242, %v290_v4  }
  0x4b   : > { %1257 = vset.pattern.permute.xlu0 %v1336_v17 }
  0x4c   : > { %665 = vperm.xlu0 %1257, %v291_v2  }
  0x4d   : > { %1243 = vset.pattern.permute.xlu1 %v1332_v3 }
  0x4e   : > { %312 = vperm.xlu1 %1243, %v286_v13  }
  0x50   : > { %661 = vperm.xlu0 %1257, %v290_v4   ;;  %v1593_v4 = vrot.slane %v283_v42, %v598_v57 }
  0x52   : > { %381 = vperm.xlu1 %1243, %v295_v18  }
  0x54   : > { %657 = vperm.xlu0 %1257, %v289_v6  }
  0x56   : > { %1244 = vset.pattern.permute.xlu1 %v1334_v9 }
  0x57   : > { %509 = vperm.xlu1 %1244, %v288_v11  }
  0x58   : > { %653 = vperm.xlu0 %1257, %v288_v11  }
  0x5b   : > { %1245 = vset.pattern.permute.xlu1 %v1335_v10 }
  0x5c   : > { %585 = vperm.xlu1 %1245, %v289_v6   ;;  %645 = vperm.xlu0 %1257, %v286_v13   ;;  %v670_v6 = vsub.s32 4, %v1530_v37 }
  0x60   : > { %1246 = vset.pattern.permute.xlu1 %v1332_v3  ;;  %637 = vperm.xlu0 %1257, %v284_v16  }
  0x61   : > { %307 = vperm.xlu1 %1246, %v1470_v14  }
  0x64   : > { %1261 = vset.pattern.permute.xlu0 %v1332_v3 }
  0x65   : > { %376 = vperm.xlu1 %1246, %v294_v19   ;;  %747 = vperm.xlu0 %1261, %v733_v47  }
  0x69   : > { %1247 = vset.pattern.permute.xlu1 %v1334_v9  ;;  %944 = vperm.xlu0 %1261, %v934_v53  }
  0x6a   : > { %505 = vperm.xlu1 %1247, %v287_v12  }
  0x6d   : > { %762 = vperm.xlu0 %1261, %v736_v63  }
  0x6e   : > { %1248 = vset.pattern.permute.xlu1 %v1335_v10 }
  0x6f   : > { %581 = vperm.xlu1 %1248, %v288_v11   ;;  %v935_v11 = vld [vmem:[%s1842_s5 + $0x8] sm:$0xff] }
  0x73   : > { %1249 = vset.pattern.permute.xlu1 %v1332_v3 }
  0x74   : > { %302 = vperm.xlu1 %1249, %v284_v16  }
  0x78   : > { %371 = vperm.xlu1 %1249, %v293_v20   ;;  %v1616_v20 = vrot.slane %v282_v41, %v670_v6 }
  0x7c   : > { %1250 = vset.pattern.permute.xlu1 %v1334_v9 }
  0x7d   : > { %501 = vperm.xlu1 %1250, %v286_v13  }
  0x81   : > { %1251 = vset.pattern.permute.xlu1 %v1335_v10 }
  0x82   : > { %577 = vperm.xlu1 %1251, %v287_v12  }
  0x86   : > { %1252 = vset.pattern.permute.xlu1 %v1332_v3 }
  0x87   : > { %366 = vperm.xlu1 %1252, %v292_v21   ;;  %v1618_v21 = vrot.slane %v283_v42, %v670_v6  ;;  %v739_v6 = vld [vmem:[%s1841_s4 + $0x38] sm:$0xff] }
  0x8b   : > { %1253 = vset.pattern.permute.xlu1 %v1333_v5 }
  0x8c   : > { %421 = vperm.xlu1 %1253, %v284_v16  }
  0x90   : > { %1255 = vset.pattern.permute.xlu1 %v1335_v10 }
  0x91   : > { %573 = vperm.xlu1 %1255, %v286_v13  }
  0x93   : > { %v1504_v22 = vpop.permute.xlu1 %401  ;;  %v338_v23 = vpop.permute.xlu0 %337 }
  0x94   : > { %v362_v58 = vmul.f32 %v1554_v48, %v338_v23  ;;  %v363_v59 = vmul.f32 %v1557_v49, %v338_v23 }
  0x95   : > { %1256 = vset.pattern.permute.xlu1 %v1336_v17 }
  0x96   : > { %649 = vperm.xlu1 %1256, %v287_v12   ;;  %v418_v7 = vadd.f32 %v1504_v22, %v362_v58  ;;  %v419_v8 = vadd.f32 %v1504_v22, %v363_v59 }
  0x97   : > { %v1506_v24 = vpop.permute.xlu0 %332 }
  0x98   : > { %v450_v25 = vpop.permute.xlu1 %449  ;;  %v360_v12 = vmul.f32 %v1554_v48, %v1506_v24  ;;  %v361_v13 = vmul.f32 %v1557_v49, %v1506_v24 }
  0x99   : > { %v474_v0 = vmul.f32 %v1568_v54, %v450_v25  ;;  %v475_v1 = vmul.f32 %v1570_v55, %v450_v25 }
  0x9a   : > { %1258 = vset.pattern.permute.xlu1 %v1335_v10 }
  0x9b   : > { %569 = vperm.xlu1 %1258, %v1470_v14   ;;  %v1510_v26 = vpop.permute.xlu0 %327  ;;  %v490_v15 = vadd.f32 %v474_v0, %v418_v7 }
  0x9d   : > { %v1512_v27 = vpop.permute.xlu1 %396 }
  0x9f   : > { %565 = vperm.xlu1 %1258, %v284_v16   ;;  %v1514_v28 = vpop.permute.xlu0 %391  ;;  %v491_v16 = vadd.f32 %v475_v1, %v419_v8 }
  0xa2   : > { %v522_v29 = vpop.permute.xlu1 %521 }
  0xa3   : > { %1259 = vset.pattern.permute.xlu1 %v1336_v17  ;;  %v546_v9 = vmul.f32 %v1577_v60, %v522_v29  ;;  %v547_v10 = vmul.f32 %v1579_v61, %v522_v29 }
  0xa4   : > { %v1517_v30 = vpop.permute.xlu0 %593  ;;  %641 = vperm.xlu1 %1259, %v1470_v14   ;;  %v737_v14 = vld [vmem:[%s1841_s4 + $0x28] sm:$0xff] }
  0xa5   : > { %v562_v22 = vadd.f32 %v546_v9, %v490_v15  ;;  %v563_v23 = vadd.f32 %v547_v10, %v491_v16  ;;  %v619_v25 = vmul.f32 %v1593_v4, %v1517_v30  ;;  %767 = vperm.xlu0 %1261, %v737_v14  }
  0xa7   : > { %v1520_v31 = vpop.permute.xlu1 %322 }
  0xa8   : > { %1260 = vset.pattern.permute.xlu1 %v1332_v3  ;;  %v1591_v3 = vrot.slane %v282_v41, %v598_v57  ;;  %v417_v41 = vadd.f32 %v1512_v27, %v361_v13 }
  0xa9   : > { %v446_v32 = vpop.permute.xlu0 %445  ;;  %742 = vperm.xlu1 %1260, %v732_v46  }
  0xaa   : > { %v472_v18 = vmul.f32 %v1568_v54, %v446_v32  ;;  %v473_v19 = vmul.f32 %v1570_v55, %v446_v32  ;;  %v618_v24 = vmul.f32 %v1591_v3, %v1517_v30  ;;  %v416_v32 = vadd.f32 %v1512_v27, %v360_v12  ;;  %v738_v30 = vld [vmem:[%s1841_s4 + $0x30] sm:$0xff] }
  0xab   : > { %v635_v27 = vadd.f32 %v619_v25, %v563_v23  ;;  %772 = vperm.xlu0 %1261, %v738_v30   ;;  %v359_v23 = vmul.f32 %v1557_v49, %v1510_v26 }
  0xac   : > { %v1525_v35 = vpop.permute.xlu1 %441  ;;  %v488_v47 = vadd.f32 %v472_v18, %v416_v32  ;;  %v489_v50 = vadd.f32 %v473_v19, %v417_v41  ;;  %v634_v58 = vadd.f32 %v618_v24, %v562_v22  ;;  %v940_v41 = vld [vmem:[%s1842_s5 + $0x30] sm:$0xff] }
  0xad   : > { %v1527_v36 = vpop.permute.xlu0 %437  ;;  %752 = vperm.xlu1 %1260, %v734_v51  }
  0xaf   : > { %777 = vperm.xlu0 %1261, %v739_v6  }
  0xb1   : > { %v1532_v38 = vpop.permute.xlu1 %517  ;;  %v1534_v39 = vpop.permute.xlu0 %433  ;;  %757 = vperm.xlu1 %1260, %v735_v62  }
  0xb2   : > { %v544_v42 = vmul.f32 %v1577_v60, %v1532_v38  ;;  %v545_v46 = vmul.f32 %v1579_v61, %v1532_v38  ;;  %v937_v38 = vld [vmem:[%s1842_s5 + $0x18] sm:$0xff]  ;;  %v466_v7 = vmul.f32 %v1568_v54, %v1534_v39  ;;  %v467_v8 = vmul.f32 %v1570_v55, %v1534_v39 }
  0xb3   : > { %v358_v39 = vmul.f32 %v1554_v48, %v1510_v26  ;;  %974 = vperm.xlu0 %1261, %v940_v41   ;;  %v468_v41 = vmul.f32 %v1568_v54, %v1527_v36 }
  0xb4   : > { %v560_v63 = vadd.f32 %v544_v42, %v488_v47  ;;  %v561_v0 = vadd.f32 %v545_v46, %v489_v50  ;;  %v415_v50 = vadd.f32 %v1514_v28, %v359_v23 }
  0xb5   : > { %v1542_v43 = vpop.permute.xlu0 %429  ;;  %949 = vperm.xlu1 %1260, %v935_v11   ;;  %v414_v47 = vadd.f32 %v1514_v28, %v358_v39 }
  0xb6   : > { %v1545_v45 = vpop.permute.xlu1 %317 }
  0xb7   : > { %v354_v11 = vmul.f32 %v1554_v48, %v1545_v45  ;;  %v355_v12 = vmul.f32 %v1557_v49, %v1545_v45  ;;  %v938_v45 = vld [vmem:[%s1842_s5 + $0x20] sm:$0xff] }
  0xb9   : > { %v1563_v52 = vpop.permute.xlu0 %425  ;;  %954 = vperm.xlu1 %1260, %v936_v44  }
  0xba   : > { %v1572_v56 = vpop.permute.xlu1 %386 }
  0xbd   : > { %959 = vperm.xlu1 %1260, %v937_v38  }
  0xbe   : > { %v1589_v2 = vpop.permute.xlu0 %497 }
  0xbf   : > { %v1595_v5 = vpop.permute.xlu1 %513 }
  0xc0   : > { %v543_v28 = vmul.f32 %v1579_v61, %v1595_v5 }
  0xc1   : > { %964 = vperm.xlu1 %1260, %v938_v45  }
  0xc2   : > { %v1612_v17 = vpop.permute.xlu0 %493 }
  0xc4   : > { %v590_v29 = vpop.permute.xlu1 %589 }
  0xc5   : > { %v616_v51 = vmul.f32 %v1591_v3, %v590_v29  ;;  %v617_v53 = vmul.f32 %v1593_v4, %v590_v29 }
  0xc7   : > { %v666_v57 = vpop.permute.xlu0 %665  ;;  %v632_v13 = vadd.f32 %v616_v51, %v560_v63  ;;  %v633_v14 = vadd.f32 %v617_v53, %v561_v0  ;;  %v470_v51 = vmul.f32 %v1568_v54, %v1525_v35  ;;  %v471_v53 = vmul.f32 %v1570_v55, %v1525_v35  ;;  %v941_v63 = vld [vmem:[%s1842_s5 + $0x38] sm:$0xff] }
  0xc8   : > { %v690_v59 = vmul.f32 %v1616_v20, %v666_v57  ;;  %v691_v62 = vmul.f32 %v1618_v21, %v666_v57  ;;  %v939_v57 = vld [vmem:[%s1842_s5 + $0x28] sm:$0xff] }
  0xc9   : > { %v1643_v1 = vpop.permute.xlu1 %312  ;;  %969 = vperm.xlu1 %1260, %v939_v57   ;;  %v487_v35 = vadd.f32 %v471_v53, %v415_v50 }
  0xca   : > { %v707_v9 = vadd.f32 %v691_v62, %v635_v27  ;;  %v706_v10 = vadd.f32 %v690_v59, %v634_v58  ;;  %v1024_v27 = vld [vmem:[#allocation2] sm:$0x1]  ;;  %v542_v59 = vmul.f32 %v1577_v60, %v1595_v5  ;;  %v486_v62 = vadd.f32 %v470_v51, %v414_v47 }
  0xcb   : > { %v662_v15 = vpop.permute.xlu0 %661  ;;  %1027 = vperm.xlu0 %1261, %v1024_v27   ;;  %v559_v6 = vadd.f32 %v543_v28, %v487_v35  ;;  %v352_v39 = vmul.f32 %v1554_v48, %v1643_v1  ;;  %v353_v23 = vmul.f32 %v1557_v49, %v1643_v1  ;;  %v469_v1 = vmul.f32 %v1570_v55, %v1527_v36 }
  0xcc   : > { %v688_v16 = vmul.f32 %v1616_v20, %v662_v15  ;;  %v689_v18 = vmul.f32 %v1618_v21, %v662_v15  ;;  %v723_v19 = vmax.f32 %v707_v9, 0.0  ;;  %v722_v22 = vmax.f32 %v706_v10, 0.0 }
  0xcd   : > { %v382_v24 = vpop.permute.xlu1 %381  ;;  %v558_v0 = vadd.f32 %v542_v59, %v486_v62  ;;  %979 = vperm.xlu1 %1260, %v941_v63  }
  0xce   : > { %v704_v25 = vadd.f32 %v688_v16, %v632_v13  ;;  %v705_v29 = vadd.f32 %v689_v18, %v633_v14  ;;  %v410_v44 = vadd.f32 %v382_v24, %v354_v11  ;;  %v411_v32 = vadd.f32 %v382_v24, %v355_v12  ;;  %821 = vmatprep.subr.mxu0 %v723_v19 }
  0xcf   : > { %1168 = vmatprep.subr.mxu1 %v723_v19  ;;  %822 = vmatpush1.msra.mxu0 %v722_v22  ;;  %v658_v38 = vpop.permute.xlu0 %657  ;;  %v464_v19 = vmul.f32 %v1568_v54, %v1542_v43 }
  0xd0   : > { %v1668_v42 = vadd.f32 %v466_v7, %v410_v44  ;;  %v1670_v46 = vadd.f32 %v467_v8, %v411_v32  ;;  %1176 = vmatpush1.msra.mxu1 %v722_v22  ;;  %v721_v26 = vmax.f32 %v705_v29, 0.0  ;;  %v720_v30 = vmax.f32 %v704_v25, 0.0 }
  0xd1   : > { %v686_v5 = vmul.f32 %v1616_v20, %v658_v38  ;;  %v687_v10 = vmul.f32 %v1618_v21, %v658_v38  ;;  %v465_v22 = vmul.f32 %v1570_v55, %v1542_v43  ;;  %v356_v29 = vmul.f32 %v1554_v48, %v1520_v31 }
  0xd2   : > { %v510_v58 = vpop.permute.xlu1 %509  ;;  %823 = vmatprep.subr.mxu0 %v721_v26  ;;  %1169 = vmatprep.subr.mxu1 %v721_v26  ;;  %v357_v44 = vmul.f32 %v1557_v49, %v1520_v31 }
  0xd3   : > { %824 = vmatpush1.msra.mxu0 %v720_v30  ;;  %1177 = vmatpush1.msra.mxu1 %v720_v30  ;;  %v412_v26 = vadd.f32 %v1572_v56, %v356_v29  ;;  %v540_v50 = vmul.f32 %v1577_v60, %v510_v58  ;;  %v541_v51 = vmul.f32 %v1579_v61, %v510_v58  ;;  %v654_v53 = vpop.permute.xlu0 %653 }
  0xd4   : > { %v413_v30 = vadd.f32 %v1572_v56, %v357_v44  ;;  %v684_v59 = vmul.f32 %v1616_v20, %v654_v53  ;;  %v685_v28 = vmul.f32 %v1618_v21, %v654_v53 }
  0xd5   : > { %v484_v57 = vadd.f32 %v468_v41, %v412_v26 }
  0xd6   : > { %v485_v31 = vadd.f32 %v469_v1, %v413_v30 }
  0xd7   : > { %v586_v7 = vpop.permute.xlu1 %585  ;;  %v556_v62 = vadd.f32 %v540_v50, %v484_v57  ;;  %v646_v57 = vpop.permute.xlu0 %645 }
  0xd8   : > { %v614_v8 = vmul.f32 %v1591_v3, %v586_v7  ;;  %v615_v9 = vmul.f32 %v1593_v4, %v586_v7  ;;  %v557_v35 = vadd.f32 %v541_v51, %v485_v31 }
  0xda   : > { %v630_v11 = vadd.f32 %v614_v8, %v558_v0  ;;  %v631_v12 = vadd.f32 %v615_v9, %v559_v6 }
  0xdc   : > { %v702_v13 = vadd.f32 %v686_v5, %v630_v11  ;;  %v703_v14 = vadd.f32 %v687_v10, %v631_v12  ;;  %v308_v15 = vpop.permute.xlu1 %307  ;;  %v462_v10 = vmul.f32 %v1568_v54, %v1563_v52  ;;  %v463_v11 = vmul.f32 %v1570_v55, %v1563_v52 }
  0xdd   : > { %v350_v9 = vmul.f32 %v1554_v48, %v308_v15  ;;  %v351_v5 = vmul.f32 %v1557_v49, %v308_v15  ;;  %v534_v12 = vmul.f32 %v1577_v60, %v1589_v2 }
  0xde   : > { %v719_v16 = vmax.f32 %v703_v14, 0.0  ;;  %v718_v18 = vmax.f32 %v702_v13, 0.0  ;;  %v535_v14 = vmul.f32 %v1579_v61, %v1589_v2 }
  0xe0   : > { %v377_v24 = vpop.permute.xlu1 %376  ;;  %825 = vmatprep.subr.mxu0 %v719_v16  ;;  %1170 = vmatprep.subr.mxu1 %v719_v16 }
  0xe1   : > { %v408_v45 = vadd.f32 %v377_v24, %v352_v39  ;;  %v409_v25 = vadd.f32 %v377_v24, %v353_v23  ;;  %826 = vmatpush1.msra.mxu0 %v718_v18  ;;  %1178 = vmatpush1.msra.mxu1 %v718_v18 }
  0xe3   : > { %v480_v43 = vadd.f32 %v464_v19, %v408_v45  ;;  %v481_v32 = vadd.f32 %v465_v22, %v409_v25 }
  0xe5   : > { %v506_v47 = vpop.permute.xlu1 %505 }
  0xe6   : > { %v538_v2 = vmul.f32 %v1577_v60, %v506_v47  ;;  %v539_v44 = vmul.f32 %v1579_v61, %v506_v47  ;;  %v680_v47 = vmul.f32 %v1616_v20, %v646_v57 }
  0xe8   : > { %v554_v31 = vadd.f32 %v538_v2, %v1668_v42 }
  0xea   : > { %v582_v27 = vpop.permute.xlu1 %581 }
  0xeb   : > { %v612_v36 = vmul.f32 %v1591_v3, %v582_v27  ;;  %v613_v38 = vmul.f32 %v1593_v4, %v582_v27  ;;  %v555_v27 = vadd.f32 %v539_v44, %v1670_v46 }
  0xed   : > { %v628_v56 = vadd.f32 %v612_v36, %v556_v62  ;;  %v629_v63 = vadd.f32 %v613_v38, %v557_v35 }
  0xef   : > { %v700_v0 = vadd.f32 %v684_v59, %v628_v56  ;;  %v701_v6 = vadd.f32 %v685_v28, %v629_v63  ;;  %v303_v7 = vpop.permute.xlu1 %302  ;;  %v681_v59 = vmul.f32 %v1618_v21, %v646_v57  ;;  %v726_v57 = vld [vmem:[%s1840_s3 + $0x10] sm:$0xff] }
  0xf1   : > { %v717_v58 = vmax.f32 %v701_v6, 0.0  ;;  %v716_v8 = vmax.f32 %v700_v0, 0.0  ;;  %v348_v6 = vmul.f32 %v1554_v48, %v303_v7 }
  0xf3   : > { %v372_v13 = vpop.permute.xlu1 %371  ;;  %827 = vmatprep.subr.mxu0 %v717_v58  ;;  %1171 = vmatprep.subr.mxu1 %v717_v58 }
  0xf4   : > { %v406_v16 = vadd.f32 %v372_v13, %v350_v9  ;;  %v407_v18 = vadd.f32 %v372_v13, %v351_v5  ;;  %828 = vmatpush1.msra.mxu0 %v716_v8  ;;  %1179 = vmatpush1.msra.mxu1 %v716_v8 }
  0xf6   : > { %v478_v15 = vadd.f32 %v462_v10, %v406_v16  ;;  %v479_v19 = vadd.f32 %v463_v11, %v407_v18  ;;  %v533_v16 = vmul.f32 %v1579_v61, %v1612_v17 }
  0xf8   : > { %v502_v22 = vpop.permute.xlu1 %501  ;;  %v1726_v39 = vadd.f32 %v534_v12, %v478_v15  ;;  %v1728_v23 = vadd.f32 %v535_v14, %v479_v19  ;;  %v638_v15 = vpop.permute.xlu0 %637 }
  0xf9   : > { %v537_v25 = vmul.f32 %v1579_v61, %v502_v22  ;;  %v536_v29 = vmul.f32 %v1577_v60, %v502_v22 }
  0xfb   : > { %v553_v30 = vadd.f32 %v537_v25, %v481_v32  ;;  %v552_v53 = vadd.f32 %v536_v29, %v480_v43  ;;  %v349_v43 = vmul.f32 %v1557_v49, %v303_v7 }
  0xfd   : > { %v578_v52 = vpop.permute.xlu1 %577 }
  0xfe   : > { %v610_v50 = vmul.f32 %v1591_v3, %v578_v52  ;;  %v611_v51 = vmul.f32 %v1593_v4, %v578_v52 }
 0x100   : > { %v626_v36 = vadd.f32 %v610_v50, %v554_v31  ;;  %v627_v38 = vadd.f32 %v611_v51, %v555_v27  ;;  %v730_v31 = vld [vmem:[%s1840_s3 + $0x30] sm:$0xff]  ;;  %v727_v27 = vld [vmem:[%s1840_s3 + $0x18] sm:$0xff] }
 0x102   : > { %v367_v24 = vpop.permute.xlu1 %366 }
 0x103   : > { %v405_v9 = vadd.f32 %v367_v24, %v349_v43  ;;  %v404_v12 = vadd.f32 %v367_v24, %v348_v6 }
 0x107   : > { %v422_v45 = vpop.permute.xlu1 %421 }
 0x108   : > { %v461_v63 = vmul.f32 %v1570_v55, %v422_v45  ;;  %v460_v58 = vmul.f32 %v1568_v54, %v422_v45  ;;  %v532_v54 = vmul.f32 %v1577_v60, %v1612_v17  ;;  %v677_v45 = vmul.f32 %v1618_v21, %v638_v15 }
 0x10a   : > { %v477_v13 = vadd.f32 %v461_v63, %v405_v9  ;;  %v476_v49 = vadd.f32 %v460_v58, %v404_v12 }
 0x10c   : > { %v574_v41 = vpop.permute.xlu1 %573  ;;  %v549_v52 = vadd.f32 %v533_v16, %v477_v13  ;;  %v548_v24 = vadd.f32 %v532_v54, %v476_v49 }
 0x10d   : > { %v608_v1 = vmul.f32 %v1591_v3, %v574_v41  ;;  %v609_v26 = vmul.f32 %v1593_v4, %v574_v41  ;;  %v676_v41 = vmul.f32 %v1616_v20, %v638_v15 }
 0x10f   : > { %v625_v28 = vadd.f32 %v609_v26, %v553_v30  ;;  %v624_v62 = vadd.f32 %v608_v1, %v552_v53  ;;  %v729_v53 = vld [vmem:[%s1840_s3 + $0x28] sm:$0xff] }
 0x111   : > { %v650_v35 = vpop.permute.xlu1 %649  ;;  %v697_v46 = vadd.f32 %v681_v59, %v625_v28  ;;  %v696_v8 = vadd.f32 %v680_v47, %v624_v62  ;;  %v731_v59 = vld [vmem:[%s1840_s3 + $0x38] sm:$0xff]  ;;  %v748_v62 = vpop.permute.xlu0 %747 }
 0x112   : > { %v682_v32 = vmul.f32 %v1616_v20, %v650_v35  ;;  %v683_v56 = vmul.f32 %v1618_v21, %v650_v35 }
 0x113   : > { %v713_v14 = vmax.f32 %v697_v46, 0.0  ;;  %v712_v55 = vmax.f32 %v696_v8, 0.0 }
 0x114   : > { %v698_v42 = vadd.f32 %v682_v32, %v626_v36  ;;  %v699_v0 = vadd.f32 %v683_v56, %v627_v38 }
 0x115   : > { %v945_v36 = vpop.permute.xlu0 %944 }
 0x116   : > { %v570_v5 = vpop.permute.xlu1 %569  ;;  %v715_v10 = vmax.f32 %v699_v0, 0.0  ;;  %v714_v11 = vmax.f32 %v698_v42, 0.0 }
 0x117   : > { %v606_v19 = vmul.f32 %v1591_v3, %v570_v5  ;;  %v607_v22 = vmul.f32 %v1593_v4, %v570_v5 }
 0x118   : > { %829 = vmatprep.subr.mxu0 %v715_v10  ;;  %1172 = vmatprep.subr.mxu1 %v715_v10 }
 0x119   : > { %830 = vmatpush1.msra.mxu0 %v714_v11  ;;  %1180 = vmatpush1.msra.mxu1 %v714_v11  ;;  %v622_v60 = vadd.f32 %v606_v19, %v1726_v39  ;;  %v623_v17 = vadd.f32 %v607_v22, %v1728_v23  ;;  %v724_v23 = vld [vmem:[%s1840_s3] sm:$0xff]  ;;  %v763_v32 = vpop.permute.xlu0 %762 }
 0x11a   : > { %v566_v48 = vpop.permute.xlu1 %565  ;;  %831 = vmatprep.subr.mxu0 %v713_v14  ;;  %1173 = vmatprep.subr.mxu1 %v713_v14 }
 0x11b   : > { %v604_v7 = vmul.f32 %v1591_v3, %v566_v48  ;;  %v605_v18 = vmul.f32 %v1593_v4, %v566_v48  ;;  %832 = vmatpush1.msra.mxu0 %v712_v55  ;;  %1181 = vmatpush1.msra.mxu1 %v712_v55 }
 0x11d   : > { %v621_v61 = vadd.f32 %v605_v18, %v549_v52  ;;  %v620_v25 = vadd.f32 %v604_v7, %v548_v24 }
 0x11f   : > { %v642_v29 = vpop.permute.xlu1 %641  ;;  %v693_v4 = vadd.f32 %v677_v45, %v621_v61  ;;  %v692_v26 = vadd.f32 %v676_v41, %v620_v25 }
 0x120   : > { %v678_v2 = vmul.f32 %v1616_v20, %v642_v29  ;;  %v679_v44 = vmul.f32 %v1618_v21, %v642_v29  ;;  %v728_v20 = vld [vmem:[%s1840_s3 + $0x20] sm:$0xff]  ;;  %v725_v21 = vld [vmem:[%s1840_s3 + $0x8] sm:$0xff]  ;;  %v768_v0 = vpop.permute.xlu0 %767 }
 0x121   : > { %v709_v51 = vmax.f32 %v693_v4, 0.0  ;;  %v708_v39 = vmax.f32 %v692_v26, 0.0 }
 0x122   : > { %v694_v3 = vadd.f32 %v678_v2, %v622_v60  ;;  %v695_v1 = vadd.f32 %v679_v44, %v623_v17 }
 0x124   : > { %v711_v30 = vmax.f32 %v695_v1, 0.0  ;;  %v710_v50 = vmax.f32 %v694_v3, 0.0  ;;  %v743_v28 = vpop.permute.xlu1 %742 }
 0x126   : > { %833 = vmatprep.subr.mxu0 %v711_v30  ;;  %1174 = vmatprep.subr.mxu1 %v711_v30  ;;  %v773_v55 = vpop.permute.xlu0 %772 }
 0x127   : > { %834 = vmatpush1.msra.mxu0 %v710_v50  ;;  %1182 = vmatpush1.msra.mxu1 %v710_v50 }
 0x128   : > { %835 = vmatprep.subr.mxu0 %v709_v51  ;;  %1175 = vmatprep.subr.mxu1 %v709_v51  ;;  %v753_v47 = vpop.permute.xlu1 %752 }
 0x129   : > { %836 = vmatpush1.msra.mxu0 %v708_v39  ;;  %1183 = vmatpush1.msra.mxu1 %v708_v39 }
 0x12a   : > { %1152 = vmatmul.mubr.msk.f32.vlgmr.msra.gmra.mxu0 %vm780_vm0, %v724_v23  ;;  %1156 = vmatmul.mubr.msk.f32.vlgmr.msra.gmra.mxu1 %vm780_vm0, %v728_v20 }
 0x12b   : > { %875 = vmatprep.mubr.f32.mxu0 %v1337_v33  ;;  %899 = vmatprep.mubr.f32.mxu1 %v1337_v33 }
 0x12c   : > { %v758_v35 = vpop.permute.xlu1 %757 }
 0x12e   : > { %1153 = vmatmul.mubr.msk.f32.gmra.mxu0 %vm780_vm0, %v725_v21  ;;  %1157 = vmatmul.mubr.msk.f32.gmra.mxu1 %vm780_vm0, %v729_v53  ;;  %v778_v21 = vpop.permute.xlu0 %777 }
 0x12f   : > { %881 = vmatprep.mubr.f32.mxu0 %v1337_v33  ;;  %905 = vmatprep.mubr.f32.mxu1 %v1337_v33 }
 0x130   : > { %v950_v38 = vpop.permute.xlu1 %949 }
 0x132   : > { %1154 = vmatmul.mubr.msk.f32.gmra.mxu0 %vm780_vm0, %v726_v57  ;;  %1158 = vmatmul.mubr.msk.f32.gmra.mxu1 %vm780_vm0, %v730_v31 }
 0x133   : > { %887 = vmatprep.mubr.f32.mxu0 %v1337_v33  ;;  %911 = vmatprep.mubr.f32.mxu1 %v1337_v33 }
 0x134   : > { %v955_v33 = vpop.permute.xlu1 %954 }
 0x136   : > { %1155 = vmatmul.mubr.msk.f32.gmra.mxu0 %vm780_vm0, %v727_v27  ;;  %1159 = vmatmul.mubr.msk.f32.gmra.mxu1 %vm780_vm0, %v731_v59 }
 0x138   : > { %v960_v58 = vpop.permute.xlu1 %959 }
 0x13c   : > { %v965_v22 = vpop.permute.xlu1 %964 }
 0x1ea   : > { %v871_v56 = vpop.f32.mrf.mxu0  ;;  %v895_v43 = vpop.f32.mrf.mxu1 }
 0x1eb   : > { %v872_v8 = vadd.f32 %v871_v56, %v743_v28  ;;  %v896_v48 = vadd.f32 %v895_v43, %v763_v32 }
 0x1ec   : > { %v873_v63 = vpop.f32.mrf.mxu0  ;;  %v897_v42 = vpop.f32.mrf.mxu1 }
 0x1ed   : > { %v874_v9 = vadd.f32 %v873_v63, %v743_v28  ;;  %v918_v16 = vmax.f32 %v872_v8, 0.0  ;;  %v898_v52 = vadd.f32 %v897_v42, %v763_v32  ;;  %v926_v44 = vmax.f32 %v896_v48, 0.0  ;;  %v970_v32 = vpop.permute.xlu1 %969 }
 0x1ee   : > { %v877_v46 = vpop.f32.mrf.mxu0  ;;  %v901_v6 = vpop.f32.mrf.mxu1 }
 0x1ef   : > { %v878_v5 = vadd.f32 %v877_v46, %v748_v62  ;;  %v919_v18 = vmax.f32 %v874_v9, 0.0  ;;  %v902_v45 = vadd.f32 %v901_v6, %v768_v0  ;;  %v982_v2 = vmul.f32 %v945_v36, %v918_v16 }
 0x1f0   : > { %v879_v10 = vpop.f32.mrf.mxu0  ;;  %v903_v11 = vpop.f32.mrf.mxu1  ;;  %v927_v51 = vmax.f32 %v898_v52, 0.0 }
 0x1f1   : > { %v880_v12 = vadd.f32 %v879_v10, %v748_v62  ;;  %v920_v13 = vmax.f32 %v878_v5, 0.0  ;;  %v983_v1 = vmul.f32 %v945_v36, %v919_v18  ;;  %v904_v4 = vadd.f32 %v903_v11, %v768_v0  ;;  %v975_v10 = vpop.permute.xlu0 %974 }
 0x1f2   : > { %v883_v14 = vpop.f32.mrf.mxu0  ;;  %v907_v49 = vpop.f32.mrf.mxu1  ;;  %v928_v53 = vmax.f32 %v902_v45, 0.0  ;;  %v990_v36 = vmul.f32 %v965_v22, %v926_v44  ;;  %v991_v6 = vmul.f32 %v965_v22, %v927_v51 }
 0x1f3   : > { %v921_v54 = vmax.f32 %v880_v12, 0.0  ;;  %v884_v7 = vadd.f32 %v883_v14, %v753_v47  ;;  %v984_v24 = vmul.f32 %v950_v38, %v920_v13  ;;  %v908_v26 = vadd.f32 %v907_v49, %v773_v55 }
 0x1f4   : > { %v885_v15 = vpop.f32.mrf.mxu0  ;;  %v909_v19 = vpop.f32.mrf.mxu1  ;;  %v929_v56 = vmax.f32 %v904_v4, 0.0 }
 0x1f5   : > { %v922_v61 = vmax.f32 %v884_v7, 0.0  ;;  %v985_v25 = vmul.f32 %v950_v38, %v921_v54  ;;  %v886_v29 = vadd.f32 %v885_v15, %v753_v47  ;;  %v998_v39 = vadd.f32 %v984_v24, %v982_v2 }
 0x1f6   : > { %v889_v60 = vpop.f32.mrf.mxu0  ;;  %v913_v17 = vpop.f32.mrf.mxu1  ;;  %v910_v27 = vadd.f32 %v909_v19, %v773_v55  ;;  %v930_v43 = vmax.f32 %v908_v26, 0.0  ;;  %v993_v11 = vmul.f32 %v970_v32, %v929_v56 }
 0x1f7   : > { %v986_v41 = vmul.f32 %v955_v33, %v922_v61  ;;  %v890_v3 = vadd.f32 %v889_v60, %v758_v35  ;;  %v923_v30 = vmax.f32 %v886_v29, 0.0  ;;  %v1011_v57 = vadd.f32 %v985_v25, %v983_v1  ;;  %v980_v55 = vpop.permute.xlu1 %979  ;;  %v1028_v60 = vpop.permute.xlu0 %1027 }
 0x1f8   : > { %v891_v50 = vpop.f32.mrf.mxu0  ;;  %v915_v59 = vpop.f32.mrf.mxu1  ;;  %v914_v62 = vadd.f32 %v913_v17, %v778_v21  ;;  %v931_v8 = vmax.f32 %v910_v27, 0.0  ;;  %v994_v12 = vmul.f32 %v975_v10, %v930_v43  ;;  %v1033_v44 = vrot.slane %v1028_v60, %v1540_v40 }
 0x1f9   : > { %v924_v23 = vmax.f32 %v890_v3, 0.0  ;;  %v892_v20 = vadd.f32 %v891_v50, %v758_v35  ;;  %v987_v31 = vmul.f32 %v955_v33, %v923_v30  ;;  %v999_v28 = vadd.f32 %v998_v39, %v986_v41 }
 0x1fa   : > { %v916_v46 = vadd.f32 %v915_v59, %v778_v21  ;;  %v992_v35 = vmul.f32 %v970_v32, %v928_v53  ;;  %v932_v5 = vmax.f32 %v914_v62, 0.0  ;;  %v995_v16 = vmul.f32 %v975_v10, %v931_v8 }
 0x1fb   : > { %v988_v47 = vmul.f32 %v960_v58, %v924_v23  ;;  %v925_v38 = vmax.f32 %v892_v20, 0.0  ;;  %v1012_v63 = vadd.f32 %v1011_v57, %v987_v31  ;;  %v1338_v21 = vmov 1966171168  }
 0x1fc   : > { %v933_v49 = vmax.f32 %v916_v46, 0.0  ;;  %v996_v48 = vmul.f32 %v980_v55, %v932_v5  ;;  %v1052_v53 = vunpack.c.l.s4 %v1338_v21 }
 0x1fd   : > { %v1000_v42 = vadd.f32 %v999_v28, %v988_v47  ;;  %v989_v0 = vmul.f32 %v960_v58, %v925_v38 }
 0x1fe   : > { %v997_v58 = vmul.f32 %v980_v55, %v933_v49  ;;  %v1053_v40 = vunpack.c.0.s8 %v1052_v53 }
 0x1ff   : > { %v1001_v9 = vadd.f32 %v1000_v42, %v990_v36  ;;  %v1013_v33 = vadd.f32 %v1012_v63, %v989_v0 }
 0x200   : > { %v1056_v31 = vsub.s32 %v1053_v40, %v1530_v37 }
 0x201   : > { %v1002_v13 = vadd.f32 %v1001_v9, %v992_v35  ;;  %v1014_v14 = vadd.f32 %v1013_v33, %v991_v6 }
 0x203   : > { %v1003_v54 = vadd.f32 %v1002_v13, %v994_v12  ;;  %v1015_v7 = vadd.f32 %v1014_v14, %v993_v11 }
 0x205   : > { %v1004_v18 = vadd.f32 %v1003_v54, %v996_v48  ;;  %v1016_v15 = vadd.f32 %v1015_v7, %v995_v16 }
 0x207   : > { %v1005_v19 = vrot.slane %v1004_v18, 4  ;;  %v1017_v22 = vadd.f32 %v1016_v15, %v997_v58 }
 0x209   : > { %v1006_v52 = vadd.f32 %v1005_v19, %v1004_v18  ;;  %v1018_v24 = vrot.slane %v1017_v22, 4 }
 0x20b   : > { %v1007_v61 = vrot.slane %v1006_v52, 2  ;;  %v1019_v45 = vadd.f32 %v1018_v24, %v1017_v22 }
 0x20d   : > { %v1008_v25 = vadd.f32 %v1007_v61, %v1006_v52  ;;  %v1020_v29 = vrot.slane %v1019_v45, 2 }
 0x20f   : > { %v1009_v17 = vrot.slane %v1008_v25, 1  ;;  %v1021_v2 = vadd.f32 %v1020_v29, %v1019_v45 }
 0x211   : > { %v1010_v41 = vadd.f32 %v1009_v17, %v1008_v25  ;;  %v1022_v3 = vrot.slane %v1021_v2, 1 }
 0x213   : > { %v1034_v1 = vadd.f32 %v1033_v44, %v1010_v41  ;;  %v1023_v4 = vadd.f32 %v1022_v3, %v1021_v2 }
 0x215   : > { %v1160_v26 = vmul.f32 -1.442695, %v1034_v1  ;;  %v1035_v30 = vadd.f32 %v1033_v44, %v1023_v4 }
 0x217   : > { %1262 = vpow2.f32 %v1160_v26  ;;  %v1161_v50 = vmul.f32 -1.442695, %v1035_v30 }
 0x219   : > { %1264 = vpow2.f32 %v1161_v50 }
 0x224   : > { %v1263_v51 = vpop.eup %1262 }
 0x225   : > { %v1042_v39 = vadd.f32 1.0, %v1263_v51 }
 0x226   : > { %v1265_v23 = vpop.eup %1264 }
 0x227   : > { %v1043_v20 = vadd.f32 1.0, %v1265_v23  ;;  %1266 = vrcp.f32 %v1042_v39 }
 0x229   : > { %1268 = vrcp.f32 %v1043_v20 }
 0x234   : > { %v1267_v57 = vpop.eup %1266 }
 0x236   : > { %v1269_v27 = vpop.eup %1268 }
 0x237   : > { %v1050_v59 = vcombine.low %v1267_v57, %v1269_v27 }
 0x239   : > { %v1057_v28 = vrot.slane %v1050_v59, %v1056_v31 }
 0x23b   : > { %v1064_v47 = vrot.slane %v1057_v28, %v1056_v31 }
 0x23d   : > { %1070 = vst.msk [vmem:[%s274_s9] sm:$0x3] %vm1068_vm1, %v1064_v47 }
 0x23e   : > { %1283 = shalt.err (!%p1280_p3)
}
 0x23f   : > { %s1284_s21 = scalar_lea.hbm %s1084_s16, 32  ;;  %s1288_s24 = scalar_lea.hbm %s1844_s7, 64 }
 0x240   : > { %p1285_p4 = scmp.ne.s32.totalorder %s1084_s16, %s1284_s21  ;;  %p1289_p9 = scmp.lt.s32.totalorder %s1084_s16, %s1844_s7 }
 0x241   : > { %p1290_p10 = scmp.lt.s32.totalorder %s1288_s24, %s1284_s21 }
 0x242   : > { %p1286_p7 = pnand %p1285_p4, %p1421_p5 }
 0x243   : > { %p1291_p11 = por %p1290_p10, %p1289_p9 }
 0x244   : > { %p1287_p8 = pneg %p1286_p7 }
 0x246   : > { %p1292_p12 = pnand %p1291_p11, %p1287_p8 }
 0x248   : > { %1295 = shalt.err (!%p1292_p12)
}
 0x249   : > { %1184 = dma.vmem_to_hbm [thread:$0]  (%p1421_p5), %s1087_s10, 32, %s1084_s16, %s1072_s17  }
 0x24a PF: > { %p1190_p13 = scmp.ge.s32.totalorder %s1330_s29, 2  ;;  %s1098_s9 = sand.u32 1, %s1318_s26  }
 0x24b   : > { %s1099_s14 = scalar_lea.sflag [#allocation4], %s1098_s9 }
 0x24c   : > { %p1187_p0 = pnand %p1190_p13, %p1425_p6 }
 0x24e   : > { %p1188_p1 = pneg %p1187_p0 }
 0x250   : > { %1313 = dma.done.wait (%p1188_p1), %s1099_s14, 32  }
 0x251   : > { %1315 = vsyncadd (%p1188_p1), %s1099_s14, 4294967264  ;;  %p19_p2 = scmp.ge.s32.totalorder %s1408_s8, 4   ;;  %s1847_s26 = smov %s1322_s27 }
 0x252   : > { %s1848_s27 = smov %s1326_s28  ;;  %s1849_s28 = smov %s1419_s11 }
 0x253   : > { %s1850_s29 = smov %s1408_s8  ;;  %21 = sbr.rel (!%p19_p2) target bundleno = 6 (0x6), region = 83 }
 0x258   :  { %1104 = vsyncpa [#allocation4], 1 }
 0x259   :  { %1106 = vsyncpa [#allocation4 + $0x1], 1 }

</bundles_post_ra>
